<compile_context>
chip_gen: v7x
topology: tpu7x:2x2x1
jax: 0.10.0
libtpu: 0.0.40
codegen_flags: <defaults>
</compile_context>

<pallas_src>
import jax
import jax.numpy as jnp
from jax.experimental import pallas as pl
from jax.experimental.pallas import tpu as pltpu


def _round_up(x, m):
    return (x + m - 1) // m * m


def _device_kind():
    try:
        return jax.devices()[0].device_kind.lower()
    except Exception:
        return ""


def _lane_pad(d):
    """Pad d to a multiple of 128 only if the waste is <= 25%; otherwise keep
    the exact dim (a full-array block dim is always a legal lane size)."""
    dp = _round_up(d, 128)
    return dp if dp <= d + d // 4 else d


def _choose_row_tile(m_rows):
    kind = _device_kind()
    if ("v5e" in kind) or ("v5 lite" in kind) or ("v5lite" in kind):
        base = 128                      # matches v5e's 128x128 MXUs
    elif "v6" in kind:
        base = 512                      # small per-step tiles -> push toward HBM roofline
    else:
        base = 256                      # v7x / default (2x 256x256 MXU)
    # Ensure enough grid steps to (a) overlap DMA with compute and (b) keep
    # both v7x TensorCores fed (>= ~4 steps per core).
    two_cores = not (("v5" in kind) or ("v6" in kind))
    min_steps = 8 if two_cores else 4
    tm = min(base, _round_up(max(pl.cdiv(m_rows, min_steps), 8), 8))
    return max(tm, 8)


def hybrid_embed_kernel(p_ref, w_ref, b_ref, o_ref):
    # p_ref: (TM, Kp)  bf16 im2col patch rows for this row tile
    # w_ref: (Kp, Ep)  bf16 fused (conv -> proj) weight, resident across tiles
    # b_ref: (1,  Ep)  f32  fused bias, resident across tiles
    # o_ref: (TM, Ep)  output tile
    acc = jnp.dot(p_ref[...], w_ref[...], preferred_element_type=jnp.float32)
    o_ref[...] = (acc + b_ref[...]).astype(o_ref.dtype)


def hybrid_embed(x_nchw, conv_w, conv_b, proj_w, proj_b, *, patch,
                 out_dtype=None, single_buffer_resident=True):
    """x_nchw: (B, C, H, W); conv_w: (F, C, p, p) (PyTorch Conv2d layout);
    conv_b: (F,); proj_w: (E, F) (PyTorch Linear layout); proj_b: (E,).
    Returns (B, N, E) with N = (H//p)*(W//p)."""
    B, C, H, W = x_nchw.shape
    F_dim = conv_w.shape[0]
    E = proj_w.shape[0]
    Hp, Wp = H // patch, W // patch
    N = Hp * Wp
    Kdim = C * patch * patch
    M = B * N
    out_dtype = x_nchw.dtype if out_dtype is None else out_dtype

    # --- weight pre-fusion (valid only for the linear patchify backbone) ---
    wc = conv_w.reshape(F_dim, Kdim).T.astype(jnp.float32)            # (Kdim, F)
    wp = proj_w.T.astype(jnp.float32)                                 # (F, E)
    w_fused = wc @ wp                                                  # (Kdim, E)
    b_fused = conv_b.astype(jnp.float32) @ wp + proj_b.astype(jnp.float32)  # (E,)

    # --- im2col: one fused reshape/transpose/cast pass over the activation ---
    # (B, C, H, W) -> (B, Hp, Wp, C, p, p) -> (B*N, Kdim), cast to bf16 so the
    # materialized (or fused-in) patch matrix is half the HBM bytes.
    patches = (x_nchw.reshape(B, C, Hp, patch, Wp, patch)
               .transpose(0, 2, 4, 1, 3, 5)
               .reshape(M, Kdim)
               .astype(jnp.bfloat16))

    # --- lane sizing (pad only when cheap), NO row (M) padding at all ---
    Kp = _lane_pad(Kdim)
    Ep = _lane_pad(E)
    if Kp != Kdim:
        # zero-padded K lanes multiply zero weight rows -> no effect on output
        patches = jnp.pad(patches, ((0, 0), (0, Kp - Kdim)))
    if Kp != Kdim or Ep != E:
        w_fused = jnp.pad(w_fused, ((0, Kp - Kdim), (0, Ep - E)))
    w_p = w_fused.astype(jnp.bfloat16)
    b_p = jnp.pad(b_fused, (0, Ep - E)).reshape(1, Ep).astype(jnp.float32)

    TM = _choose_row_tile(M)
    grid = (pl.cdiv(M, TM),)

    # VMEM budget: double-buffered patch/output tiles + resident weight/bias
    # (counted double-buffered as a worst case), 2x headroom, clamped to fit
    # v7x's smaller scoped VMEM.
    out_itemsize = jnp.dtype(out_dtype).itemsize
    bytes_needed = (2 * TM * Kp * 2                 # bf16 patch tiles
                    + 2 * TM * Ep * out_itemsize    # output tiles
                    + 2 * Kp * Ep * 2               # fused weight (bf16)
                    + 2 * Ep * 4)                   # fused bias (f32)
    vmem_limit = int(min(max(2 * bytes_needed, 4 << 20), 32 << 20))

    def resident_spec(shape):
        # Constant index_map => the block never changes; single-buffer it so
        # the saved VMEM can go to deeper patch buffering instead.
        if single_buffer_resident:
            return pl.BlockSpec(shape, lambda i: (0, 0),
                                pipeline_mode=pl.Buffered(1))
        return pl.BlockSpec(shape, lambda i: (0, 0))

    cost = pl.CostEstimate(
        flops=2 * M * Kp * Ep,
        transcendentals=0,
        bytes_accessed=M * Kp * 2 + Kp * Ep * 2 + Ep * 4 + M * Ep * out_itemsize,
    )

    out = pl.pallas_call(
        hybrid_embed_kernel,
        out_shape=jax.ShapeDtypeStruct((M, Ep), out_dtype),
        grid_spec=pl.GridSpec(
            grid=grid,
            in_specs=[
                pl.BlockSpec((TM, Kp), lambda i: (i, 0)),
                resident_spec((Kp, Ep)),
                resident_spec((1, Ep)),
            ],
            out_specs=pl.BlockSpec((TM, Ep), lambda i: (i, 0)),
        ),
        compiler_params=pltpu.CompilerParams(
            dimension_semantics=("parallel",),
            vmem_limit_bytes=vmem_limit,
            allow_input_fusion=[True, False, False],
        ),
        cost_estimate=cost,
    )(patches, w_p, b_p)

    if Ep != E:
        out = out[:, :E]
    return out.reshape(B, N, E)


if __name__ == "__main__":
    # Small shapes consistent with the module's forward:
    #   B=2, in_chans=4, img=16x16, backbone patchify stride=4
    #   -> feature map (B, F=32, 4, 4), N = 16 patches, embed_dim E = 32
    B, C, H, W = 2, 4, 16, 16
    patch = 4
    F_dim, E = 32, 32

    key = jax.random.PRNGKey(0)
    kx, kcw, kcb, kpw, kpb = jax.random.split(key, 5)

    x = jax.random.normal(kx, (B, C, H, W), dtype=jnp.float32)
    conv_w = 0.05 * jax.random.normal(kcw, (F_dim, C, patch, patch), jnp.float32)
    conv_b = 0.05 * jax.random.normal(kcb, (F_dim,), jnp.float32)
    proj_w = 0.05 * jax.random.normal(kpw, (E, F_dim), jnp.float32)
    proj_b = 0.05 * jax.random.normal(kpb, (E,), jnp.float32)

    def make_runner(single_buffer_resident):
        def fn(x_, cw, cb, pw, pb):
            return hybrid_embed(x_, cw, cb, pw, pb, patch=patch,
                                single_buffer_resident=single_buffer_resident)
        return jax.jit(fn)

    try:
        out = jax.block_until_ready(
            make_runner(True)(x, conv_w, conv_b, proj_w, proj_b))
    except Exception:
        # pl.Buffered / pipeline_mode may be unavailable on this jax version;
        # retry with default (double-buffered) resident operands.
        out = jax.block_until_ready(
            make_runner(False)(x, conv_w, conv_b, proj_w, proj_b))

    # pure-JAX f32 reference (conv via lax, then flatten/transpose + linear)
    feat = jax.lax.conv_general_dilated(
        x, conv_w, window_strides=(patch, patch), padding="VALID",
        dimension_numbers=("NCHW", "OIHW", "NCHW")) + conv_b[None, :, None, None]
    ref = feat.reshape(B, F_dim, -1).transpose(0, 2, 1) @ proj_w.T + proj_b

    assert out.shape == (B, (H // patch) * (W // patch), E)
    # bf16 matmul inputs + weight pre-fusion change rounding slightly vs the
    # f32 reference; use a bf16-appropriate tolerance.
    assert jnp.allclose(out, ref, atol=1e-2, rtol=1e-2), (
        float(jnp.max(jnp.abs(out - ref))))

    print("KERNEL_OK")
</pallas_src>

<mosaic_0001>
module attributes {stable_mosaic.version = 11 : i64} {
  func.func @hybrid_embed_kernel(%arg0: i32, %arg1: memref<8x64xbf16, #tpu.memory_space<vmem>>, %arg2: memref<64x32xbf16, #tpu.memory_space<vmem>>, %arg3: memref<1x32xf32, #tpu.memory_space<vmem>>, %arg4: memref<8x32xf32, #tpu.memory_space<vmem>>) attributes {dimension_semantics = [#tpu.dimension_semantics<parallel>], iteration_bounds = array<i64: 4>, scalar_prefetch = 0 : i64, scratch_operands = 0 : i64, tpu.core_type = #tpu.core_type<tc>, window_params = [{transform_indices = @transform_0, window_bounds = array<i64: 8, 64>}, {pipeline_mode = #tpu.pipeline_mode<synchronous>, transform_indices = @transform_1, window_bounds = array<i64: 64, 32>}, {pipeline_mode = #tpu.pipeline_mode<synchronous>, transform_indices = @transform_2, window_bounds = array<i64: 1, 32>}, {transform_indices = @transform_3, window_bounds = array<i64: 8, 32>}]} {
    %c0 = arith.constant 0 : index
    %c0_0 = arith.constant 0 : index
    %0 = vector.load %arg1[%c0, %c0_0] : memref<8x64xbf16, #tpu.memory_space<vmem>>, vector<8x64xbf16>
    %c0_1 = arith.constant 0 : index
    %c0_2 = arith.constant 0 : index
    %1 = vector.load %arg2[%c0_1, %c0_2] : memref<64x32xbf16, #tpu.memory_space<vmem>>, vector<64x32xbf16>
    %cst = arith.constant dense<0.000000e+00> : vector<8x32xf32>
    %2 = tpu.matmul %0, %1, %cst {dimension_numbers = #tpu.dot_dimension_numbers<[1], [0], [0], [1], [0, 0, 1, 1], [], []>} : vector<8x64xbf16>, vector<64x32xbf16>, vector<8x32xf32> -> vector<8x32xf32>
    %c0_3 = arith.constant 0 : index
    %c0_4 = arith.constant 0 : index
    %3 = vector.load %arg3[%c0_3, %c0_4] : memref<1x32xf32, #tpu.memory_space<vmem>>, vector<1x32xf32>
    %4 = vector.broadcast %3 : vector<1x32xf32> to vector<8x32xf32>
    %5 = arith.addf %2, %4 : vector<8x32xf32>
    %c0_5 = arith.constant 0 : index
    %c0_6 = arith.constant 0 : index
    %6 = vector.load %arg4[%c0_5, %c0_6] : memref<8x32xf32, #tpu.memory_space<vmem>>, vector<8x32xf32>
    tpu.vector_store %arg4[%c0_5, %c0_6], %5 {strides = array<i32>} : memref<8x32xf32, #tpu.memory_space<vmem>>, vector<8x32xf32>,
    return
  }
  func.func @transform_0(%arg0: i32) -> (i32, i32) {
    %c0_i32 = arith.constant 0 : i32
    %c0_i32_0 = arith.constant 0 : i32
    return %arg0, %c0_i32 : i32, i32
  }
  func.func @transform_1(%arg0: i32) -> (i32, i32) {
    %c0_i32 = arith.constant 0 : i32
    %c0_i32_0 = arith.constant 0 : i32
    %c0_i32_1 = arith.constant 0 : i32
    return %c0_i32, %c0_i32_0 : i32, i32
  }
  func.func @transform_2(%arg0: i32) -> (i32, i32) {
    %c0_i32 = arith.constant 0 : i32
    %c0_i32_0 = arith.constant 0 : i32
    %c0_i32_1 = arith.constant 0 : i32
    return %c0_i32, %c0_i32_0 : i32, i32
  }
  func.func @transform_3(%arg0: i32) -> (i32, i32) {
    %c0_i32 = arith.constant 0 : i32
    %c0_i32_0 = arith.constant 0 : i32
    return %arg0, %c0_i32 : i32, i32
  }
}

module attributes {stable_mosaic.version = 11 : i64} {
  func.func @hybrid_embed_kernel(%arg0: i32, %arg1: memref<8x64xbf16, #tpu.memory_space<vmem>>, %arg2: memref<64x32xbf16, #tpu.memory_space<vmem>>, %arg3: memref<1x32xf32, #tpu.memory_space<vmem>>, %arg4: memref<8x32xf32, #tpu.memory_space<vmem>>) attributes {dimension_semantics = [#tpu.dimension_semantics<parallel>], iteration_bounds = array<i64: 4>, scalar_prefetch = 0 : i64, scratch_operands = 0 : i64, tpu.core_type = #tpu.core_type<tc>, window_params = [{transform_indices = @transform_0, window_bounds = array<i64: 8, 64>}, {pipeline_mode = #tpu.pipeline_mode<synchronous>, transform_indices = @transform_1, window_bounds = array<i64: 64, 32>}, {pipeline_mode = #tpu.pipeline_mode<synchronous>, transform_indices = @transform_2, window_bounds = array<i64: 1, 32>}, {transform_indices = @transform_3, window_bounds = array<i64: 8, 32>}]} {
    %c0 = arith.constant 0 : index
    %c0_0 = arith.constant 0 : index
    %0 = vector.load %arg1[%c0, %c0_0] : memref<8x64xbf16, #tpu.memory_space<vmem>>, vector<8x64xbf16>
    %c0_1 = arith.constant 0 : index
    %c0_2 = arith.constant 0 : index
    %1 = vector.load %arg2[%c0_1, %c0_2] : memref<64x32xbf16, #tpu.memory_space<vmem>>, vector<64x32xbf16>
    %cst = arith.constant dense<0.000000e+00> : vector<8x32xf32>
    %2 = tpu.matmul %0, %1, %cst {dimension_numbers = #tpu.dot_dimension_numbers<[1], [0], [0], [1], [0, 0, 1, 1], [], []>} : vector<8x64xbf16>, vector<64x32xbf16>, vector<8x32xf32> -> vector<8x32xf32>
    %c0_3 = arith.constant 0 : index
    %c0_4 = arith.constant 0 : index
    %3 = vector.load %arg3[%c0_3, %c0_4] : memref<1x32xf32, #tpu.memory_space<vmem>>, vector<1x32xf32>
    %4 = vector.broadcast %3 : vector<1x32xf32> to vector<8x32xf32>
    %5 = arith.addf %2, %4 : vector<8x32xf32>
    %c0_5 = arith.constant 0 : index
    %c0_6 = arith.constant 0 : index
    %6 = vector.load %arg4[%c0_5, %c0_6] : memref<8x32xf32, #tpu.memory_space<vmem>>, vector<8x32xf32>
    tpu.vector_store %arg4[%c0_5, %c0_6], %5 {strides = array<i32>} : memref<8x32xf32, #tpu.memory_space<vmem>>, vector<8x32xf32>,
    return
  }
  func.func @transform_0(%arg0: i32) -> (i32, i32) {
    %c0_i32 = arith.constant 0 : i32
    %c0_i32_0 = arith.constant 0 : i32
    return %arg0, %c0_i32 : i32, i32
  }
  func.func @transform_1(%arg0: i32) -> (i32, i32) {
    %c0_i32 = arith.constant 0 : i32
    %c0_i32_0 = arith.constant 0 : i32
    %c0_i32_1 = arith.constant 0 : i32
    return %c0_i32, %c0_i32_0 : i32, i32
  }
  func.func @transform_2(%arg0: i32) -> (i32, i32) {
    %c0_i32 = arith.constant 0 : i32
    %c0_i32_0 = arith.constant 0 : i32
    %c0_i32_1 = arith.constant 0 : i32
    return %c0_i32, %c0_i32_0 : i32, i32
  }
  func.func @transform_3(%arg0: i32) -> (i32, i32) {
    %c0_i32 = arith.constant 0 : i32
    %c0_i32_0 = arith.constant 0 : i32
    return %arg0, %c0_i32 : i32, i32
  }
}

</mosaic_0001>

<bundles_post_ra>
// kernel: fn.1
= control target key start
LH: loop header
LB: loop body
LE: loop exit
PB: predicated region body
PF: predicated region fallthrough
CT: control target
= control target key end

     0   :  { %8 = vsyncpa [#allocation3], 0  ;;  %s606_s0 = inlined_call_operand.vmem [shape: bf16[32,64], index: 0, kind: input, shape index: {}]   ;;  %s607_s1 = inlined_call_operand.vmem [shape: bf16[64,32], index: 1, kind: input, shape index: {}]   ;;  %s608_s2 = inlined_call_operand.vmem [shape: f32[1,32], index: 2, kind: input, shape index: {}]   ;;  %s609_s3 = inlined_call_operand.hbm [shape: f32[32,32], index: 3, kind: output, shape index: {}]  }
   0x1   :  { %10 = vsyncpa [#allocation3 + $0x1], 0  ;;  %s491_s12 = smov 0   ;;  %s493_s13 = smov 0  }
   0x2   :  { %s495_s14 = smov 0   ;;  %s497_s15 = smov 0  }
   0x3 LB: > { %s512_s16 = sadd.s32 4294967295, %s466_s15   ;;  %s326_s17 = sadd.s32 4294967294, %s466_s15   ;;  %s466_s15 = sphi %s497_s15, %s615_s15   ;;  %s462_s14 = sphi %s495_s14, %s614_s14   ;;  %s458_s13 = sphi %s493_s13, %s613_s13   ;;  %s454_s12 = sphi %s491_s12, %s612_s12  }
   0x4   : > { %s516_s18 = sadd.s32 1, %s466_s15   ;;  %s91_s19 = sadd.s32 1, %s462_s14 }
   0x5   : > { %s88_s20 = ssub.s32 %s466_s15, %s516_s18  ;;  %p101_p0 = scmp.ne.s32.totalorder %s462_s14, %s458_s13 }
   0x6   : > { %p89_p1 = scmp.eq.s32.totalorder %s88_s20, 0  ;;  %p102_p2 = scmp.eq.s32.totalorder %s512_s16, 3 }
   0x7   : > { %p107_p3 = scmp.ne.s32.totalorder %s458_s13, %s454_s12  ;;  %p108_p4 = scmp.eq.s32.totalorder %s326_s17, 3 }
   0x8   : > { %s527_s21 = scalar_select %p89_p1, %s462_s14, %s91_s19  }
   0x9   : > { %p529_p5 = por %p102_p2, %p101_p0  ;;  %p533_p6 = por %p108_p4, %p107_p3 }
   0xa   : > { %p329_p7 = scmp.ge.s32.totalorder %s466_s15, 1  ;;  %p139_p8 = scmp.lt.s32.totalorder %s466_s15, 5 }
   0xc   : > { %p140_p9 = pnand %p329_p7, %p139_p8 }
   0xd   : > { %v400_v0 = vld [vmem:[%s607_s1] sm:$0xff] (!%p140_p9)   ;;  %v468_v1 = vmov (!%p140_p9), 0.0   ;;  %v401_v2 = vld [vmem:[%s607_s1 + $0x8] sm:$0xff] (!%p140_p9)   ;;  %vm469_vm0 = vmmov (!%p140_p9), 0   ;;  %p162_p10 = scmp.lt.s32.totalorder (!%p140_p9), %s512_s16, 3  ;;  %v402_v3 = vld [vmem:[%s607_s1 + $0x10] sm:$0xff] (!%p140_p9)  }
   0xe   : > { %143 = sbr.rel (%p140_p9) target bundleno = 258 (0x102), region = 32  ;;  %347 = vmatprep.subr.bf16.mxu0 (!%p140_p9), %v468_v1  ;;  %355 = vmatprep.mubr.msk.bf16.mxu0 (!%p140_p9), %vm469_vm0, %v468_v1  ;;  %v403_v4 = vld [vmem:[%s607_s1 + $0x18] sm:$0xff] (!%p140_p9)   ;;  %vm207_vm1 = vcmask (!%p140_p9), 523264   ;;  %s159_s10 = sand.u32 (!%p140_p9), 1, %s458_s13   ;;  %v332_v6 = vld [vmem:[%s608_s2] ss:$0 sm:$0xff] (!%p140_p9) }
   0xf   : > { %348 = vmatpush3.bf16.msra.mxu0 (!%p140_p9), %v400_v0  ;;  %s330_s11 = sshll.u32 (!%p140_p9), %s159_s10, 3  ;;  %s339_s20 = sshll.u32 (!%p140_p9), %s512_s16, 7  ;;  %vm251_vm2 = vcmask (!%p140_p9), 261120  }
  0x10   : > { %349 = vmatprep.subr.bf16.mxu0 (!%p140_p9), %v468_v1  ;;  %s161_s24 = scalar_lea.vmem (!%p140_p9), [#allocation2], %s330_s11  ;;  %s470_s30 = smov (!%p140_p9), [#allocation2]  }
  0x11   : > { %s267_s25 = sshll.u32 (!%p140_p9), %s161_s24, 4  ;;  %s566_s25 = int_to_ptr.vmem [resolvable:$true] %s267_s25 }
  0x12   : > { %s404_s29 = scalar_lea.vmem (!%p140_p9), %s566_s25, 128 }
  0x13   : > { %350 = vmatpush3.bf16.msra.mxu0 (!%p140_p9), %v401_v2  ;;  %p405_p11 = scmp.ne.s32.totalorder (!%p140_p9), %s566_s25, %s404_s29 }
  0x14   : > { %351 = vmatprep.subr.bf16.mxu0 (!%p140_p9), %v468_v1 }
  0x15   : > { %s163_s28 = scalar_select %p162_p10, %s512_s16, 3 }
  0x16   : > { %s254_s16 = scalar_lea.sflag [#allocation3], %s159_s10  ;;  %p406_p12 = pnand %p405_p11, %p529_p5 }
  0x17   : > { %s331_s4 = sshll.u32 %s163_s28, 2  ;;  %352 = vmatpush3.bf16.msra.mxu0 %v402_v3  ;;  %s564_s28 = scalar_lea.hbm %s609_s3, %s339_s20 }
  0x18   : > { %353 = vmatprep.subr.bf16.mxu0 %v468_v1  ;;  %s165_s9 = scalar_lea.vmem %s606_s0, %s331_s4  ;;  %p407_p13 = pneg %p406_p12 }
  0x19   : > { %v167_v5 = vld [vmem:[%s165_s9] sm:$0xf]  ;;  %s408_s4 = sshll.u32 %s470_s30, 4  ;;  %s409_s4 = int_to_ptr.vmem [resolvable:$false] %s408_s4 }
  0x1a   : > { %s410_s5 = scalar_lea.vmem %s409_s4, 256  ;;  %p411_p0 = scmp.lt.s32.totalorder %s566_s25, %s409_s4 }
  0x1b   : > { %354 = vmatpush3.bf16.msra.mxu0 %v403_v4  ;;  %p412_p1 = scmp.lt.s32.totalorder %s410_s5, %s404_s29 }
  0x1d   : > { %p413_p2 = por %p412_p1, %p411_p0 }
  0x1e   : > { %356 = vmatmul.mubr.msk.bf16.vlgmr.msra.gmra.mrb[0].mxu0 %vm207_vm1, %v167_v5 }
  0x1f   : > { %p414_p3 = pnand %p413_p2, %p407_p13 }
  0xf1   : > { %v245_v7 = vpop.f32.mrb[0].mxu0 }
  0xf2   : > { %v246_v8 = vadd.f32 %v332_v6, %v245_v7  ;;  %v357_v9 = vpop.f32.mrb[1].mxu0 }
  0xf3   : > { %v248_v10 = vpop.f32.mrb[2].mxu0 }
  0xf4   : > { %v358_v11 = vpop.f32.mrb[3].mxu0  ;;  %252 = vst.msk [vmem:[%s161_s24] sm:$0xff] %vm251_vm2, %v246_v8 }
  0xf5   : > { %417 = shalt.err (!%p414_p3)
}
  0xf6   : > { %s418_s6 = scalar_lea.hbm %s564_s28, 128  ;;  %s422_s9 = scalar_lea.hbm %s609_s3, 512 }
  0xf7   : > { %p419_p4 = scmp.ne.s32.totalorder %s564_s28, %s418_s6  ;;  %p423_p9 = scmp.lt.u32.totalorder %s564_s28, %s609_s3 }
  0xf8   : > { %p424_p10 = scmp.lt.u32.totalorder %s422_s9, %s418_s6  ;;  %p426_p12 = scmp.lt.u32.totalorder %s418_s6, %s564_s28 }
  0xf9   : > { %p420_p7 = pnand %p419_p4, %p529_p5 }
  0xfa   : > { %p425_p11 = por %p424_p10, %p423_p9 }
  0xfb   : > { %p421_p8 = pneg %p420_p7 }
  0xfc   : > { %p427_p13 = por %p426_p12, %p425_p11 }
  0xfe   : > { %p428_p0 = pnand %p427_p13, %p421_p8 }
 0x100   : > { %431 = shalt.err (!%p428_p0)
}
 0x101   : > { %359 = dma.vmem_to_hbm [thread:$0]  (%p529_p5), %s566_s25, 128, %s564_s28, %s254_s16  }
 0x102 PF: > { %p365_p1 = scmp.ge.s32.totalorder %s466_s15, 2  ;;  %s279_s17 = sand.u32 1, %s454_s12  }
 0x103   : > { %s280_s19 = scalar_lea.sflag [#allocation3], %s279_s17 }
 0x104   : > { %p362_p2 = pnand %p365_p1, %p533_p6 }
 0x106   : > { %449 = dma.done.wait (!%p362_p2), %s280_s19, 128  }
 0x107   : > { %451 = vsyncadd (!%p362_p2), %s280_s19, 4294967168  ;;  %p13_p3 = scmp.ge.s32.totalorder %s516_s18, 6   ;;  %s612_s12 = smov %s458_s13 }
 0x108   : > { %s613_s13 = smov %s462_s14  ;;  %s614_s14 = smov %s527_s21 }
 0x109   : > { %s615_s15 = smov %s516_s18  ;;  %15 = sbr.rel (!%p13_p3) target bundleno = 3 (0x3), region = 67 }
 0x110   :  { %285 = vsyncpa [#allocation3], 1 }
 0x111   :  { %287 = vsyncpa [#allocation3 + $0x1], 1 }

// kernel: fn.1
= control target key start
LH: loop header
LB: loop body
LE: loop exit
PB: predicated region body
PF: predicated region fallthrough
CT: control target
= control target key end

     0   :  { %8 = vsyncpa [#allocation3], 0  ;;  %s606_s0 = inlined_call_operand.vmem [shape: bf16[32,64], index: 0, kind: input, shape index: {}]   ;;  %s607_s1 = inlined_call_operand.vmem [shape: bf16[64,32], index: 1, kind: input, shape index: {}]   ;;  %s608_s2 = inlined_call_operand.vmem [shape: f32[1,32], index: 2, kind: input, shape index: {}]   ;;  %s609_s3 = inlined_call_operand.hbm [shape: f32[32,32], index: 3, kind: output, shape index: {}]  }
   0x1   :  { %10 = vsyncpa [#allocation3 + $0x1], 0  ;;  %s491_s12 = smov 0   ;;  %s493_s13 = smov 0  }
   0x2   :  { %s495_s14 = smov 0   ;;  %s497_s15 = smov 0  }
   0x3 LB: > { %s512_s16 = sadd.s32 4294967295, %s466_s15   ;;  %s326_s17 = sadd.s32 4294967294, %s466_s15   ;;  %s466_s15 = sphi %s497_s15, %s615_s15   ;;  %s462_s14 = sphi %s495_s14, %s614_s14   ;;  %s458_s13 = sphi %s493_s13, %s613_s13   ;;  %s454_s12 = sphi %s491_s12, %s612_s12  }
   0x4   : > { %s516_s18 = sadd.s32 1, %s466_s15   ;;  %s91_s19 = sadd.s32 1, %s462_s14 }
   0x5   : > { %s88_s20 = ssub.s32 %s466_s15, %s516_s18  ;;  %p101_p0 = scmp.ne.s32.totalorder %s462_s14, %s458_s13 }
   0x6   : > { %p89_p1 = scmp.eq.s32.totalorder %s88_s20, 0  ;;  %p102_p2 = scmp.eq.s32.totalorder %s512_s16, 3 }
   0x7   : > { %p107_p3 = scmp.ne.s32.totalorder %s458_s13, %s454_s12  ;;  %p108_p4 = scmp.eq.s32.totalorder %s326_s17, 3 }
   0x8   : > { %s527_s21 = scalar_select %p89_p1, %s462_s14, %s91_s19  }
   0x9   : > { %p529_p5 = por %p102_p2, %p101_p0  ;;  %p533_p6 = por %p108_p4, %p107_p3 }
   0xa   : > { %p329_p7 = scmp.ge.s32.totalorder %s466_s15, 1  ;;  %p139_p8 = scmp.lt.s32.totalorder %s466_s15, 5 }
   0xc   : > { %p140_p9 = pnand %p329_p7, %p139_p8 }
   0xd   : > { %v400_v0 = vld [vmem:[%s607_s1] sm:$0xff] (!%p140_p9)   ;;  %v468_v1 = vmov (!%p140_p9), 0.0   ;;  %v401_v2 = vld [vmem:[%s607_s1 + $0x8] sm:$0xff] (!%p140_p9)   ;;  %vm469_vm0 = vmmov (!%p140_p9), 0   ;;  %p162_p10 = scmp.lt.s32.totalorder (!%p140_p9), %s512_s16, 3  ;;  %v402_v3 = vld [vmem:[%s607_s1 + $0x10] sm:$0xff] (!%p140_p9)  }
   0xe   : > { %143 = sbr.rel (%p140_p9) target bundleno = 258 (0x102), region = 32  ;;  %347 = vmatprep.subr.bf16.mxu0 (!%p140_p9), %v468_v1  ;;  %355 = vmatprep.mubr.msk.bf16.mxu0 (!%p140_p9), %vm469_vm0, %v468_v1  ;;  %v403_v4 = vld [vmem:[%s607_s1 + $0x18] sm:$0xff] (!%p140_p9)   ;;  %vm207_vm1 = vcmask (!%p140_p9), 523264   ;;  %s159_s10 = sand.u32 (!%p140_p9), 1, %s458_s13   ;;  %v332_v6 = vld [vmem:[%s608_s2] ss:$0 sm:$0xff] (!%p140_p9) }
   0xf   : > { %348 = vmatpush3.bf16.msra.mxu0 (!%p140_p9), %v400_v0  ;;  %s330_s11 = sshll.u32 (!%p140_p9), %s159_s10, 3  ;;  %s339_s20 = sshll.u32 (!%p140_p9), %s512_s16, 7  ;;  %vm251_vm2 = vcmask (!%p140_p9), 261120  }
  0x10   : > { %349 = vmatprep.subr.bf16.mxu0 (!%p140_p9), %v468_v1  ;;  %s161_s24 = scalar_lea.vmem (!%p140_p9), [#allocation2], %s330_s11  ;;  %s470_s30 = smov (!%p140_p9), [#allocation2]  }
  0x11   : > { %s267_s25 = sshll.u32 (!%p140_p9), %s161_s24, 4  ;;  %s566_s25 = int_to_ptr.vmem [resolvable:$true] %s267_s25 }
  0x12   : > { %s404_s29 = scalar_lea.vmem (!%p140_p9), %s566_s25, 128 }
  0x13   : > { %350 = vmatpush3.bf16.msra.mxu0 (!%p140_p9), %v401_v2  ;;  %p405_p11 = scmp.ne.s32.totalorder (!%p140_p9), %s566_s25, %s404_s29 }
  0x14   : > { %351 = vmatprep.subr.bf16.mxu0 (!%p140_p9), %v468_v1 }
  0x15   : > { %s163_s28 = scalar_select %p162_p10, %s512_s16, 3 }
  0x16   : > { %s254_s16 = scalar_lea.sflag [#allocation3], %s159_s10  ;;  %p406_p12 = pnand %p405_p11, %p529_p5 }
  0x17   : > { %s331_s4 = sshll.u32 %s163_s28, 2  ;;  %352 = vmatpush3.bf16.msra.mxu0 %v402_v3  ;;  %s564_s28 = scalar_lea.hbm %s609_s3, %s339_s20 }
  0x18   : > { %353 = vmatprep.subr.bf16.mxu0 %v468_v1  ;;  %s165_s9 = scalar_lea.vmem %s606_s0, %s331_s4  ;;  %p407_p13 = pneg %p406_p12 }
  0x19   : > { %v167_v5 = vld [vmem:[%s165_s9] sm:$0xf]  ;;  %s408_s4 = sshll.u32 %s470_s30, 4  ;;  %s409_s4 = int_to_ptr.vmem [resolvable:$false] %s408_s4 }
  0x1a   : > { %s410_s5 = scalar_lea.vmem %s409_s4, 256  ;;  %p411_p0 = scmp.lt.s32.totalorder %s566_s25, %s409_s4 }
  0x1b   : > { %354 = vmatpush3.bf16.msra.mxu0 %v403_v4  ;;  %p412_p1 = scmp.lt.s32.totalorder %s410_s5, %s404_s29 }
  0x1d   : > { %p413_p2 = por %p412_p1, %p411_p0 }
  0x1e   : > { %356 = vmatmul.mubr.msk.bf16.vlgmr.msra.gmra.mrb[0].mxu0 %vm207_vm1, %v167_v5 }
  0x1f   : > { %p414_p3 = pnand %p413_p2, %p407_p13 }
  0xf1   : > { %v245_v7 = vpop.f32.mrb[0].mxu0 }
  0xf2   : > { %v246_v8 = vadd.f32 %v332_v6, %v245_v7  ;;  %v357_v9 = vpop.f32.mrb[1].mxu0 }
  0xf3   : > { %v248_v10 = vpop.f32.mrb[2].mxu0 }
  0xf4   : > { %v358_v11 = vpop.f32.mrb[3].mxu0  ;;  %252 = vst.msk [vmem:[%s161_s24] sm:$0xff] %vm251_vm2, %v246_v8 }
  0xf5   : > { %417 = shalt.err (!%p414_p3)
}
  0xf6   : > { %s418_s6 = scalar_lea.hbm %s564_s28, 128  ;;  %s422_s9 = scalar_lea.hbm %s609_s3, 512 }
  0xf7   : > { %p419_p4 = scmp.ne.s32.totalorder %s564_s28, %s418_s6  ;;  %p423_p9 = scmp.lt.u32.totalorder %s564_s28, %s609_s3 }
  0xf8   : > { %p424_p10 = scmp.lt.u32.totalorder %s422_s9, %s418_s6  ;;  %p426_p12 = scmp.lt.u32.totalorder %s418_s6, %s564_s28 }
  0xf9   : > { %p420_p7 = pnand %p419_p4, %p529_p5 }
  0xfa   : > { %p425_p11 = por %p424_p10, %p423_p9 }
  0xfb   : > { %p421_p8 = pneg %p420_p7 }
  0xfc   : > { %p427_p13 = por %p426_p12, %p425_p11 }
  0xfe   : > { %p428_p0 = pnand %p427_p13, %p421_p8 }
 0x100   : > { %431 = shalt.err (!%p428_p0)
}
 0x101   : > { %359 = dma.vmem_to_hbm [thread:$0]  (%p529_p5), %s566_s25, 128, %s564_s28, %s254_s16  }
 0x102 PF: > { %p365_p1 = scmp.ge.s32.totalorder %s466_s15, 2  ;;  %s279_s17 = sand.u32 1, %s454_s12  }
 0x103   : > { %s280_s19 = scalar_lea.sflag [#allocation3], %s279_s17 }
 0x104   : > { %p362_p2 = pnand %p365_p1, %p533_p6 }
 0x106   : > { %449 = dma.done.wait (!%p362_p2), %s280_s19, 128  }
 0x107   : > { %451 = vsyncadd (!%p362_p2), %s280_s19, 4294967168  ;;  %p13_p3 = scmp.ge.s32.totalorder %s516_s18, 6   ;;  %s612_s12 = smov %s458_s13 }
 0x108   : > { %s613_s13 = smov %s462_s14  ;;  %s614_s14 = smov %s527_s21 }
 0x109   : > { %s615_s15 = smov %s516_s18  ;;  %15 = sbr.rel (!%p13_p3) target bundleno = 3 (0x3), region = 67 }
 0x110   :  { %285 = vsyncpa [#allocation3], 1 }
 0x111   :  { %287 = vsyncpa [#allocation3 + $0x1], 1 }

</bundles_post_ra>
